<compile_context>
chip_gen: v5e
topology: v5e:2x2
jax: 0.10.0
libtpu: 0.0.40
codegen_flags: <defaults>
</compile_context>

<pallas_src>
import functools

import jax
import jax.numpy as jnp
from jax.experimental import pallas as pl
from jax.experimental.pallas import tpu as pltpu  # noqa: F401  (TPU backend)


# ----------------------------- Pallas kernel ------------------------------- #

def _fused_rnn_head_kernel(*refs, num_layers, T):
    """Fused multi-layer Elman RNN + Linear + log_softmax.

    refs layout (all VMEM, single grid point):
      refs[0]                      : x        (T*B, Din)  time-major, flattened
      refs[1 + 3*l + 0]            : Wih_t    (D_l, H)    pre-transposed
      refs[1 + 3*l + 1]            : Whh_t    (H, H)      pre-transposed
      refs[1 + 3*l + 2]            : bias     (1, H)      b_ih + b_hh
      refs[1 + 3*num_layers + 0]   : fc_w_t   (H, O)      pre-transposed
      refs[1 + 3*num_layers + 1]   : fc_b     (1, O)
      refs[1 + 3*num_layers + 2]   : out      (B, O)      log-probabilities
    """
    x_ref = refs[0]
    layer_refs = refs[1:1 + 3 * num_layers]
    fcw_ref = refs[1 + 3 * num_layers]
    fcb_ref = refs[2 + 3 * num_layers]
    out_ref = refs[3 + 3 * num_layers]

    TB = x_ref.shape[0]
    B = TB // T

    seq_flat = x_ref[...]                                  # (T*B, D0)
    h = None
    for l in range(num_layers):
        wih = layer_refs[3 * l][...]                       # (D_l, H)
        whh = layer_refs[3 * l + 1][...]                   # (H, H)
        b = layer_refs[3 * l + 2][...]                     # (1, H)
        H = wih.shape[-1]

        # Hoisted, batched input projection (time-parallel work off the serial
        # chain); bias broadcast happens exactly once per layer.
        xw = jnp.dot(seq_flat, wih,
                     preferred_element_type=jnp.float32) + b   # (T*B, H)

        # Serial recurrence: static T -> fully unrolled; h lives in vregs.
        h = jnp.zeros((B, H), jnp.float32)
        hs = []
        for t in range(T):
            xw_t = xw[t * B:(t + 1) * B, :]                # static slice
            h = jnp.tanh(
                xw_t + jnp.dot(h, whh, preferred_element_type=jnp.float32))
            if l + 1 < num_layers:
                hs.append(h)
        if l + 1 < num_layers:
            # Stacked hidden states feed the next layer (row order == (T,B)).
            seq_flat = jnp.concatenate(hs, axis=0)         # (T*B, H)

    # Fused head: Linear + log_softmax on the last-timestep hidden state.
    logits = jnp.dot(h, fcw_ref[...],
                     preferred_element_type=jnp.float32) + fcb_ref[...]
    m = jnp.max(logits, axis=-1, keepdims=True)
    lse = jnp.log(jnp.sum(jnp.exp(logits - m), axis=-1, keepdims=True)) + m
    out_ref[...] = logits - lse


# ------------------------------ Python wrapper ----------------------------- #

def _full_spec(shape):
    # single grid point -> index_map takes no args, always block (0, 0, ...)
    return pl.BlockSpec(shape, lambda: (0,) * len(shape))


@functools.partial(jax.jit, static_argnames=("T", "Din", "H", "O", "num_layers"))
def _forward(layer_params, fc_w_t, fc_b, x, *, T, Din, H, O, num_layers):
    """x: (B, inputSize) -> (B, O) log-probabilities (single fused kernel)."""
    B = x.shape[0]
    xs = x.reshape(B, T, Din).astype(jnp.float32)
    xs = jnp.transpose(xs, (1, 0, 2)).reshape(T * B, Din)   # time-major, flat

    kernel = functools.partial(_fused_rnn_head_kernel,
                               num_layers=num_layers, T=T)

    in_specs = [_full_spec((T * B, Din))]
    args = [xs]
    for (wih_t, whh_t, b) in layer_params:
        in_specs += [_full_spec(wih_t.shape),
                     _full_spec(whh_t.shape),
                     _full_spec(b.shape)]
        args += [wih_t, whh_t, b]
    in_specs += [_full_spec((H, O)), _full_spec((1, O))]
    args += [fc_w_t, fc_b]

    return pl.pallas_call(
        kernel,
        out_shape=jax.ShapeDtypeStruct((B, O), jnp.float32),
        in_specs=in_specs,
        out_specs=_full_spec((B, O)),
    )(*args)


class RNNModelPallas:
    """JAX/Pallas re-implementation of RNNModel.forward (unidirectional)."""

    def __init__(self, inputSize, inputDim, hiddenNum, outputDim, layerNum, key):
        assert inputSize % inputDim == 0
        self.input_data_vector_size = inputSize
        self.inputDim = inputDim
        self.hiddenNum = hiddenNum
        self.outputDim = outputDim
        self.layerNum = layerNum
        self.T = inputSize // inputDim

        # Deterministic parameter init (uniform(-1/sqrt(H), 1/sqrt(H)) like torch).
        bound = 1.0 / jnp.sqrt(jnp.float32(hiddenNum))
        keys = jax.random.split(key, 4 * layerNum + 2)
        ki = 0
        din = inputDim
        layers = []
        for _ in range(layerNum):
            w_ih = jax.random.uniform(keys[ki], (hiddenNum, din), jnp.float32,
                                      -bound, bound); ki += 1
            w_hh = jax.random.uniform(keys[ki], (hiddenNum, hiddenNum),
                                      jnp.float32, -bound, bound); ki += 1
            b_ih = jax.random.uniform(keys[ki], (hiddenNum,), jnp.float32,
                                      -bound, bound); ki += 1
            b_hh = jax.random.uniform(keys[ki], (hiddenNum,), jnp.float32,
                                      -bound, bound); ki += 1
            # Precompute transposes + combined bias ONCE (not per forward).
            layers.append((w_ih.T,                       # (din, H)
                           w_hh.T,                       # (H, H)
                           (b_ih + b_hh).reshape(1, hiddenNum)))
            din = hiddenNum
        self.layer_params = tuple(layers)

        fc_w = jax.random.uniform(keys[ki], (outputDim, hiddenNum), jnp.float32,
                                  -bound, bound); ki += 1
        fc_b = jax.random.uniform(keys[ki], (outputDim,), jnp.float32,
                                  -bound, bound)
        self.fc_w_t = fc_w.T                              # (H, O)
        self.fc_b = fc_b.reshape(1, outputDim)            # (1, O)

    def __call__(self, x):
        return _forward(self.layer_params, self.fc_w_t, self.fc_b, x,
                        T=self.T, Din=self.inputDim, H=self.hiddenNum,
                        O=self.outputDim, num_layers=self.layerNum)


# ------------------------------ reference (JAX) ----------------------------- #

def _reference_forward(model, x):
    B = x.shape[0]
    T = model.T
    xs = x.reshape(B, T, model.inputDim).astype(jnp.float32)
    seq = jnp.transpose(xs, (1, 0, 2))                    # (T, B, D)
    h = None
    for (wih_t, whh_t, b) in model.layer_params:
        h = jnp.zeros((B, model.hiddenNum), jnp.float32)
        outs = []
        for t in range(T):
            h = jnp.tanh(seq[t] @ wih_t + h @ whh_t + b)
            outs.append(h)
        seq = jnp.stack(outs, axis=0)
    logits = h @ model.fc_w_t + model.fc_b
    return jax.nn.log_softmax(logits, axis=-1)


# ---------------------------------- main ------------------------------------ #

if __name__ == "__main__":
    key = jax.random.PRNGKey(0)
    k_param, k_data = jax.random.split(key)

    # Small deterministic config: batch=2, inputSize=64, inputDim=8 -> seq T=8
    B, inputSize, inputDim = 2, 64, 8
    hiddenNum, outputDim, layerNum = 32, 10, 1

    model = RNNModelPallas(inputSize, inputDim, hiddenNum, outputDim, layerNum,
                           key=k_param)

    x = jax.random.normal(k_data, (B, inputSize), dtype=jnp.float32)

    out = model(x)
    out = jax.block_until_ready(out)

    ref = _reference_forward(model, x)
    assert out.shape == (B, outputDim)
    assert jnp.allclose(out, ref, atol=2e-3, rtol=2e-3), "mismatch vs reference"

    print("KERNEL_OK")
</pallas_src>

<mosaic_0001>
module attributes {stable_mosaic.version = 11 : i64} {
  func.func @_fused_rnn_head_kernel(%arg0: memref<16x8xf32, #tpu.memory_space<vmem>>, %arg1: memref<8x32xf32, #tpu.memory_space<vmem>>, %arg2: memref<32x32xf32, #tpu.memory_space<vmem>>, %arg3: memref<1x32xf32, #tpu.memory_space<vmem>>, %arg4: memref<32x10xf32, #tpu.memory_space<vmem>>, %arg5: memref<1x10xf32, #tpu.memory_space<vmem>>, %arg6: memref<2x10xf32, #tpu.memory_space<vmem>>) attributes {dimension_semantics = [], scalar_prefetch = 0 : i64, scratch_operands = 0 : i64, tpu.core_type = #tpu.core_type<tc>} {
    %c0 = arith.constant 0 : index
    %c0_0 = arith.constant 0 : index
    %0 = vector.load %arg0[%c0, %c0_0] : memref<16x8xf32, #tpu.memory_space<vmem>>, vector<16x8xf32>
    %c0_1 = arith.constant 0 : index
    %c0_2 = arith.constant 0 : index
    %1 = vector.load %arg1[%c0_1, %c0_2] : memref<8x32xf32, #tpu.memory_space<vmem>>, vector<8x32xf32>
    %c0_3 = arith.constant 0 : index
    %c0_4 = arith.constant 0 : index
    %2 = vector.load %arg2[%c0_3, %c0_4] : memref<32x32xf32, #tpu.memory_space<vmem>>, vector<32x32xf32>
    %c0_5 = arith.constant 0 : index
    %c0_6 = arith.constant 0 : index
    %3 = vector.load %arg3[%c0_5, %c0_6] : memref<1x32xf32, #tpu.memory_space<vmem>>, vector<1x32xf32>
    %cst = arith.constant dense<0.000000e+00> : vector<16x32xf32>
    %4 = tpu.matmul %0, %1, %cst {dimension_numbers = #tpu.dot_dimension_numbers<[1], [0], [0], [1], [0, 0, 1, 1], [], []>} : vector<16x8xf32>, vector<8x32xf32>, vector<16x32xf32> -> vector<16x32xf32>
    %5 = vector.broadcast %3 : vector<1x32xf32> to vector<16x32xf32>
    %6 = arith.addf %4, %5 : vector<16x32xf32>
    %cst_7 = arith.constant 0.000000e+00 : f32
    %7 = vector.broadcast %cst_7 : f32 to vector<2x32xf32>
    %8 = vector.extract_strided_slice %6 {offsets = [0, 0], sizes = [2, 32], strides = [1, 1]} : vector<16x32xf32> to vector<2x32xf32>
    %cst_8 = arith.constant dense<0.000000e+00> : vector<2x32xf32>
    %9 = tpu.matmul %7, %2, %cst_8 {dimension_numbers = #tpu.dot_dimension_numbers<[1], [0], [0], [1], [0, 0, 1, 1], [], []>} : vector<2x32xf32>, vector<32x32xf32>, vector<2x32xf32> -> vector<2x32xf32>
    %10 = arith.addf %8, %9 : vector<2x32xf32>
    %11 = math.tanh %10 : vector<2x32xf32>
    %12 = vector.extract_strided_slice %6 {offsets = [2, 0], sizes = [2, 32], strides = [1, 1]} : vector<16x32xf32> to vector<2x32xf32>
    %cst_9 = arith.constant dense<0.000000e+00> : vector<2x32xf32>
    %13 = tpu.matmul %11, %2, %cst_9 {dimension_numbers = #tpu.dot_dimension_numbers<[1], [0], [0], [1], [0, 0, 1, 1], [], []>} : vector<2x32xf32>, vector<32x32xf32>, vector<2x32xf32> -> vector<2x32xf32>
    %14 = arith.addf %12, %13 : vector<2x32xf32>
    %15 = math.tanh %14 : vector<2x32xf32>
    %16 = vector.extract_strided_slice %6 {offsets = [4, 0], sizes = [2, 32], strides = [1, 1]} : vector<16x32xf32> to vector<2x32xf32>
    %cst_10 = arith.constant dense<0.000000e+00> : vector<2x32xf32>
    %17 = tpu.matmul %15, %2, %cst_10 {dimension_numbers = #tpu.dot_dimension_numbers<[1], [0], [0], [1], [0, 0, 1, 1], [], []>} : vector<2x32xf32>, vector<32x32xf32>, vector<2x32xf32> -> vector<2x32xf32>
    %18 = arith.addf %16, %17 : vector<2x32xf32>
    %19 = math.tanh %18 : vector<2x32xf32>
    %20 = vector.extract_strided_slice %6 {offsets = [6, 0], sizes = [2, 32], strides = [1, 1]} : vector<16x32xf32> to vector<2x32xf32>
    %cst_11 = arith.constant dense<0.000000e+00> : vector<2x32xf32>
    %21 = tpu.matmul %19, %2, %cst_11 {dimension_numbers = #tpu.dot_dimension_numbers<[1], [0], [0], [1], [0, 0, 1, 1], [], []>} : vector<2x32xf32>, vector<32x32xf32>, vector<2x32xf32> -> vector<2x32xf32>
    %22 = arith.addf %20, %21 : vector<2x32xf32>
    %23 = math.tanh %22 : vector<2x32xf32>
    %24 = vector.extract_strided_slice %6 {offsets = [8, 0], sizes = [2, 32], strides = [1, 1]} : vector<16x32xf32> to vector<2x32xf32>
    %cst_12 = arith.constant dense<0.000000e+00> : vector<2x32xf32>
    %25 = tpu.matmul %23, %2, %cst_12 {dimension_numbers = #tpu.dot_dimension_numbers<[1], [0], [0], [1], [0, 0, 1, 1], [], []>} : vector<2x32xf32>, vector<32x32xf32>, vector<2x32xf32> -> vector<2x32xf32>
    %26 = arith.addf %24, %25 : vector<2x32xf32>
    %27 = math.tanh %26 : vector<2x32xf32>
    %28 = vector.extract_strided_slice %6 {offsets = [10, 0], sizes = [2, 32], strides = [1, 1]} : vector<16x32xf32> to vector<2x32xf32>
    %cst_13 = arith.constant dense<0.000000e+00> : vector<2x32xf32>
    %29 = tpu.matmul %27, %2, %cst_13 {dimension_numbers = #tpu.dot_dimension_numbers<[1], [0], [0], [1], [0, 0, 1, 1], [], []>} : vector<2x32xf32>, vector<32x32xf32>, vector<2x32xf32> -> vector<2x32xf32>
    %30 = arith.addf %28, %29 : vector<2x32xf32>
    %31 = math.tanh %30 : vector<2x32xf32>
    %32 = vector.extract_strided_slice %6 {offsets = [12, 0], sizes = [2, 32], strides = [1, 1]} : vector<16x32xf32> to vector<2x32xf32>
    %cst_14 = arith.constant dense<0.000000e+00> : vector<2x32xf32>
    %33 = tpu.matmul %31, %2, %cst_14 {dimension_numbers = #tpu.dot_dimension_numbers<[1], [0], [0], [1], [0, 0, 1, 1], [], []>} : vector<2x32xf32>, vector<32x32xf32>, vector<2x32xf32> -> vector<2x32xf32>
    %34 = arith.addf %32, %33 : vector<2x32xf32>
    %35 = math.tanh %34 : vector<2x32xf32>
    %36 = vector.extract_strided_slice %6 {offsets = [14, 0], sizes = [2, 32], strides = [1, 1]} : vector<16x32xf32> to vector<2x32xf32>
    %cst_15 = arith.constant dense<0.000000e+00> : vector<2x32xf32>
    %37 = tpu.matmul %35, %2, %cst_15 {dimension_numbers = #tpu.dot_dimension_numbers<[1], [0], [0], [1], [0, 0, 1, 1], [], []>} : vector<2x32xf32>, vector<32x32xf32>, vector<2x32xf32> -> vector<2x32xf32>
    %38 = arith.addf %36, %37 : vector<2x32xf32>
    %39 = math.tanh %38 : vector<2x32xf32>
    %c0_16 = arith.constant 0 : index
    %c0_17 = arith.constant 0 : index
    %40 = vector.load %arg4[%c0_16, %c0_17] : memref<32x10xf32, #tpu.memory_space<vmem>>, vector<32x10xf32>
    %cst_18 = arith.constant dense<0.000000e+00> : vector<2x10xf32>
    %41 = tpu.matmul %39, %40, %cst_18 {dimension_numbers = #tpu.dot_dimension_numbers<[1], [0], [0], [1], [0, 0, 1, 1], [], []>} : vector<2x32xf32>, vector<32x10xf32>, vector<2x10xf32> -> vector<2x10xf32>
    %c0_19 = arith.constant 0 : index
    %c0_20 = arith.constant 0 : index
    %42 = vector.load %arg5[%c0_19, %c0_20] : memref<1x10xf32, #tpu.memory_space<vmem>>, vector<1x10xf32>
    %43 = vector.broadcast %42 : vector<1x10xf32> to vector<2x10xf32>
    %44 = arith.addf %41, %43 : vector<2x10xf32>
    %cst_21 = arith.constant dense<0xFF800000> : vector<2xf32>
    %45 = vector.multi_reduction <maximumf>, %44, %cst_21 [1] : vector<2x10xf32> to vector<2xf32>
    %46 = vector.shape_cast %45 : vector<2xf32> to vector<2x1xf32>
    %47 = vector.broadcast %46 : vector<2x1xf32> to vector<2x10xf32>
    %48 = arith.subf %44, %47 : vector<2x10xf32>
    %49 = math.exp %48 : vector<2x10xf32>
    %cst_22 = arith.constant dense<0.000000e+00> : vector<2xf32>
    %50 = vector.multi_reduction <add>, %49, %cst_22 [1] : vector<2x10xf32> to vector<2xf32>
    %51 = vector.shape_cast %50 : vector<2xf32> to vector<2x1xf32>
    %52 = math.log %51 : vector<2x1xf32>
    %53 = arith.addf %52, %46 : vector<2x1xf32>
    %54 = vector.broadcast %53 : vector<2x1xf32> to vector<2x10xf32>
    %55 = arith.subf %44, %54 : vector<2x10xf32>
    %c0_23 = arith.constant 0 : index
    %c0_24 = arith.constant 0 : index
    %56 = vector.load %arg6[%c0_23, %c0_24] : memref<2x10xf32, #tpu.memory_space<vmem>>, vector<2x10xf32>
    tpu.vector_store %arg6[%c0_23, %c0_24], %55 {strides = array<i32>} : memref<2x10xf32, #tpu.memory_space<vmem>>, vector<2x10xf32>,
    return
  }
}

</mosaic_0001>

<bundles_post_ra>
// kernel: _forward.1
= control target key start
LH: loop header
LB: loop body
LE: loop exit
PB: predicated region body
PF: predicated region fallthrough
CT: control target
= control target key end

     0   :  { %vm35_vm0 = vcmask 64512   ;;  %s504_s0 = inlined_call_operand.vmem [shape: f32[16,8], index: 0, kind: input, shape index: {}]   ;;  %s505_s1 = inlined_call_operand.vmem [shape: f32[8,32], index: 1, kind: input, shape index: {}]   ;;  %s506_s2 = inlined_call_operand.vmem [shape: f32[32,32], index: 2, kind: input, shape index: {}]   ;;  %s507_s3 = inlined_call_operand.vmem [shape: f32[1,32], index: 3, kind: input, shape index: {}]   ;;  %s508_s4 = inlined_call_operand.vmem [shape: f32[32,10], index: 4, kind: input, shape index: {}]   ;;  %s509_s5 = inlined_call_operand.vmem [shape: f32[1,10], index: 5, kind: input, shape index: {}]   ;;  %s510_s6 = inlined_call_operand.hbm [shape: f32[2,10], index: 6, kind: output, shape index: {}]  }
   0x1   :  { %v30_v0 = vld [vmem:[%s506_s2 + $0x18] sm:$0xff]  ;;  %v29_v1 = vld [vmem:[%s506_s2 + $0x10] sm:$0xff]  ;;  %v26_v2 = vld [vmem:[%s505_s1] sm:$0xff] }
   0x2   :  { %81 = vmatpush.msra.mxu1 %v30_v0  ;;  %57 = vmatpush.msra.mxu0 %v26_v2  ;;  %v24_v3 = vld [vmem:[%s504_s0] sm:$0xff]  ;;  %v28_v4 = vld [vmem:[%s506_s2 + $0x8] sm:$0xff] }
   0x3   :  { %352 = vmatmul.msk.f32.vlgmr.msra.gmra.mxu0 %vm35_vm0, %v24_v3  ;;  %106 = vmatpush.msra.mxu2 %v30_v0 }
   0x4   :  { %82 = vmatpush.msra.mxu1 %v29_v1  ;;  %135 = vmatpush.msra.mxu3 %v30_v0 }
   0x5   :  { %11 = vsyncpa [#allocation3], 0  ;;  %v27_v5 = vld [vmem:[%s506_s2] sm:$0xff]  ;;  %107 = vmatpush.msra.mxu2 %v29_v1  ;;  %247 = vmatpush.msrb.mxu0 %v30_v0  ;;  %v412_v6 = vmov 0.0   ;;  %vm65_vm1 = vcmask 261120   ;;  %v25_v23 = vld [vmem:[%s504_s0 + $0x8] sm:$0xff] }
   0x6   :  { %83 = vmatpush.msra.mxu1 %v28_v4  ;;  %136 = vmatpush.msra.mxu3 %v29_v1  ;;  %v364_v7 = vld [vmem:[%s507_s3] ss:$0 sm:$0xff]  ;;  %v292_v44 = vld [vmem:[%s508_s4 + $0x18] sm:$0xff]  ;;  %v291_v45 = vld [vmem:[%s508_s4 + $0x10] sm:$0xff]  ;;  %vm321_vm2 = vcmask 74752   ;;  %s343_s21 = sshll.u32 %s510_s6, 4  ;;  %s344_s21 = int_to_ptr.hbm [resolvable:$true] %s343_s21 }
   0x7   :  { %108 = vmatpush.msra.mxu2 %v28_v4  ;;  %248 = vmatpush.msrb.mxu0 %v29_v1  ;;  %v290_v46 = vld [vmem:[%s508_s4 + $0x8] sm:$0xff]  ;;  %v289_v47 = vld [vmem:[%s508_s4] sm:$0xff]  ;;  %s413_s4 = smov [#allocation2]  }
   0x8   :  { %84 = vmatpush.msra.mxu1 %v27_v5  ;;  %137 = vmatpush.msra.mxu3 %v28_v4  ;;  %v365_v53 = vld [vmem:[%s509_s5] ss:$0 sm:$0xff]  ;;  %s341_s5 = sshll.u32 %s413_s4, 4  ;;  %s342_s5 = int_to_ptr.vmem [resolvable:$true] %s341_s5 }
   0x9   :  { %85 = vmatmul.f32.vlgmr.msra.gmra.mxu1 %v412_v6  ;;  %109 = vmatpush.msra.mxu2 %v27_v5 }
   0xa   :  { %138 = vmatpush.msra.mxu3 %v27_v5  ;;  %164 = vmatpush.msrb.mxu1 %v30_v0 }
   0xb   :  { %193 = vmatpush.msrb.mxu2 %v30_v0  ;;  %249 = vmatpush.msrb.mxu0 %v28_v4 }
   0xc   :  { %218 = vmatpush.msrb.mxu3 %v30_v0  ;;  %165 = vmatpush.msrb.mxu1 %v29_v1 }
   0xd   :  { %194 = vmatpush.msrb.mxu2 %v29_v1  ;;  %250 = vmatpush.msrb.mxu0 %v27_v5 }
   0xe   :  { %219 = vmatpush.msrb.mxu3 %v29_v1  ;;  %166 = vmatpush.msrb.mxu1 %v28_v4 }
   0xf   :  { %195 = vmatpush.msrb.mxu2 %v28_v4  ;;  %353 = vmatmul.msk.f32.gmra.mxu0 %vm35_vm0, %v25_v23 }
  0x10   :  { %220 = vmatpush.msrb.mxu3 %v28_v4  ;;  %167 = vmatpush.msrb.mxu1 %v27_v5 }
  0x11   :  { %196 = vmatpush.msrb.mxu2 %v27_v5 }
  0x12   :  { %221 = vmatpush.msrb.mxu3 %v27_v5  ;;  %276 = vmatpush.msra.mxu1 %v30_v0 }
  0x14   :  { %277 = vmatpush.msra.mxu1 %v29_v1 }
  0x16   :  { %278 = vmatpush.msra.mxu1 %v28_v4 }
  0x18   :  { %279 = vmatpush.msra.mxu1 %v27_v5 }
  0x80   :  { %v59_v8 = vpop.f32.mrf.mxu0 }
  0x81   :  { %v60_v9 = vadd.f32 %v364_v7, %v59_v8 }
  0x86   :  { %v86_v10 = vpop.f32.mrf.mxu1 }
  0x87   :  { %v89_v11 = vadd.f32 %v86_v10, %v60_v9 }
  0x89   :  { %366 = vtanh.f32 %v89_v11 }
  0x8c   :  { %v62_v29 = vpop.f32.mrf.mxu0 }
  0x8d   :  { %v63_v30 = vadd.f32 %v364_v7, %v62_v29 }
  0x8f   :  { %v367_v12 = vpop.eup %366 }
  0x90   :  { %354 = vmatmul.msk.f32.vlgmr.msra.gmra.mxu2 %vm65_vm1, %v367_v12 }
  0x91   :  { %313 = vmatpush.msra.mxu2 %v292_v44 }
  0x93   :  { %314 = vmatpush.msra.mxu2 %v291_v45 }
  0x95   :  { %315 = vmatpush.msra.mxu2 %v290_v46 }
  0x97   :  { %316 = vmatpush.msra.mxu2 %v289_v47 }
 0x113   :  { %v111_v13 = vpop.f32.mrf.mxu2 }
 0x114   :  { %v115_v14 = vrot.slane %v111_v13, 6 }
 0x116   :  { %v117_v15 = vadd.f32 %v115_v14, %v60_v9 }
 0x118   :  { %368 = vtanh.f32 %v117_v15 }
 0x11e   :  { %v369_v16 = vpop.eup %368 }
 0x11f   :  { %v120_v17 = vrot.slane %v369_v16, 2 }
 0x121   :  { %355 = vmatmul.msk.f32.vlgmr.msra.gmra.mxu3 %vm65_vm1, %v120_v17 }
 0x1a4   :  { %v140_v18 = vpop.f32.mrf.mxu3 }
 0x1a5   :  { %v144_v19 = vrot.slane %v140_v18, 4 }
 0x1a7   :  { %v146_v20 = vadd.f32 %v144_v19, %v60_v9 }
 0x1a9   :  { %370 = vtanh.f32 %v146_v20 }
 0x1af   :  { %v371_v21 = vpop.eup %370 }
 0x1b0   :  { %v149_v22 = vrot.slane %v371_v21, 4 }
 0x1b2   :  { %356 = vmatmul.msk.f32.vlgmr.msrb.gmra.mxu1 %vm65_vm1, %v149_v22 }
 0x22f   :  { %v169_v24 = vpop.f32.mrf.mxu1 }
 0x230   :  { %v173_v25 = vrot.slane %v169_v24, 2 }
 0x232   :  { %v175_v26 = vadd.f32 %v173_v25, %v60_v9 }
 0x234   :  { %372 = vtanh.f32 %v175_v26 }
 0x23a   :  { %v373_v27 = vpop.eup %372 }
 0x23b   :  { %v178_v28 = vrot.slane %v373_v27, 6 }
 0x23d   :  { %357 = vmatmul.msk.f32.vlgmr.msrb.gmra.mxu2 %vm65_vm1, %v178_v28 }
 0x2c0   :  { %v198_v31 = vpop.f32.mrf.mxu2 }
 0x2c1   :  { %v201_v32 = vadd.f32 %v198_v31, %v63_v30 }
 0x2c3   :  { %374 = vtanh.f32 %v201_v32 }
 0x2c9   :  { %v375_v33 = vpop.eup %374 }
 0x2ca   :  { %358 = vmatmul.msk.f32.vlgmr.msrb.gmra.mxu3 %vm65_vm1, %v375_v33 }
 0x34d   :  { %v223_v34 = vpop.f32.mrf.mxu3 }
 0x34e   :  { %v227_v35 = vrot.slane %v223_v34, 6 }
 0x350   :  { %v229_v36 = vadd.f32 %v227_v35, %v63_v30 }
 0x352   :  { %376 = vtanh.f32 %v229_v36 }
 0x358   :  { %v377_v37 = vpop.eup %376 }
 0x359   :  { %v232_v38 = vrot.slane %v377_v37, 2 }
 0x35b   :  { %359 = vmatmul.msk.f32.vlgmr.msrb.gmra.mxu0 %vm65_vm1, %v232_v38 }
 0x3d8   :  { %v252_v39 = vpop.f32.mrf.mxu0 }
 0x3d9   :  { %v256_v40 = vrot.slane %v252_v39, 4 }
 0x3db   :  { %v258_v41 = vadd.f32 %v256_v40, %v63_v30 }
 0x3dd   :  { %378 = vtanh.f32 %v258_v41 }
 0x3e3   :  { %v379_v42 = vpop.eup %378 }
 0x3e4   :  { %v261_v43 = vrot.slane %v379_v42, 4 }
 0x3e6   :  { %360 = vmatmul.msk.f32.vlgmr.msra.gmra.mxu1 %vm65_vm1, %v261_v43 }
 0x463   :  { %v281_v48 = vpop.f32.mrf.mxu1 }
 0x464   :  { %v285_v49 = vrot.slane %v281_v48, 2 }
 0x466   :  { %v287_v50 = vadd.f32 %v285_v49, %v63_v30 }
 0x468   :  { %380 = vtanh.f32 %v287_v50 }
 0x46e   :  { %v381_v51 = vpop.eup %380 }
 0x46f   :  { %v298_v52 = vrot.slane %v381_v51, 6 }
 0x471   :  { %361 = vmatmul.msk.f32.vlgmr.msra.gmra.mxu2 %vm65_vm1, %v298_v52 }
 0x4f4   :  { %v318_v54 = vpop.f32.mrf.mxu2 }
 0x4f5   :  { %v319_v55 = vadd.f32 %v365_v53, %v318_v54 }
 0x4f7   :  { %v322_v56 = vsel %vm321_vm2, %v319_v55, -inf }
 0x4f8   :  { %323 = vmax.xlane.f32.xlu0 %v322_v56 }
 0x56b   :  { %v324_v57 = vpop.xlane.xlu0 %323 }
 0x56c   :  { %v325_v58 = vsub.f32 %v319_v55, %v324_v57 }
 0x56e   :  { %v326_v59 = vmul.f32 1.442695, %v325_v58 }
 0x570   :  { %382 = vpow2.f32 %v326_v59 }
 0x576   :  { %v383_v60 = vpop.eup %382 }
 0x577   :  { %v328_v61 = vsel %vm321_vm2, %v383_v60, 0.0 }
 0x578   :  { %329 = vadd.xlane.f32.xlu0 %v328_v61 }
 0x5eb   :  { %v330_v62 = vpop.xlane.xlu0 %329 }
 0x5ec   :  { %384 = vlog2.f32 %v330_v62 }
 0x5f2   :  { %v385_v63 = vpop.eup %384 }
 0x5f3   :  { %v332_v0 = vmul.f32 0.6931472, %v385_v63 }
 0x5f5   :  { %v333_v1 = vadd.f32 %v332_v0, %v324_v57 }
 0x5f7   :  { %v334_v2 = vsub.f32 %v319_v55, %v333_v1 }
 0x5f9   :  { %335 = vst.msk [vmem:[#allocation2] sm:$0x3] %vm321_vm2, %v334_v2 }
 0x5fa   :  { %346 = dma.vmem_to_hbm [thread:$0]  %s342_s5, 32, %s344_s21, [#allocation3]  }
 0x5fb   :  { %410 = dma.done.wait [#allocation3], 32  }
 0x5fc   :  { %411 = vsyncadd [#allocation3], 4294967264 }
 0x5fd   :  { %351 = vsyncpa [#allocation3], 1 }

</bundles_post_ra>
